<compile_context>
chip_gen: v7x
topology: tpu7x:2x2x1
jax: 0.10.0
libtpu: 0.0.40
codegen_flags: <defaults>
</compile_context>

<pallas_src>
import functools

import jax
import jax.numpy as jnp
from jax import lax
from jax.experimental import pallas as pl
from jax.experimental.pallas import tpu as pltpu

LN_EPS = 1e-5  # PyTorch nn.LayerNorm default


# --------------------------------------------------------------------------
# helpers
# --------------------------------------------------------------------------
def _pick_heads_per_block(heads, dim_head):
    """Smallest head group whose lane width (hpb*dim_head) is a multiple of 128."""
    for hpb in range(1, heads + 1):
        if heads % hpb == 0 and (hpb * dim_head) % 128 == 0:
            return hpb
    # TODO(synk): lane-padded fallback when heads*dim_head is not a multiple of 128.
    return heads


# --------------------------------------------------------------------------
# Fused kernel: LayerNorm + QKV projection + attention + output projection
#   grid = (B, heads // hpb)
# --------------------------------------------------------------------------
def fused_attn_kernel(x_ref, g_ref, b_ref, wq_ref, wk_ref, wv_ref, wo_ref,
                      bo_ref, o_ref, xn_ref, acc_ref, *,
                      heads_per_block, dim_head, scale):
    g = pl.program_id(1)

    @pl.when(g == 0)
    def _():
        # LayerNorm once per batch row; cached in VMEM for all head groups.
        x = x_ref[0].astype(jnp.float32)                      # (N, D)
        mu = jnp.mean(x, axis=-1, keepdims=True)
        var = jnp.mean(jnp.square(x - mu), axis=-1, keepdims=True)
        xn_ref[...] = ((x - mu) * lax.rsqrt(var + LN_EPS)) * g_ref[...] + b_ref[...]
        acc_ref[...] = jnp.zeros_like(acc_ref)

    xn = xn_ref[...]                                          # (N, D) f32

    # Project only this head group's q/k/v slabs (lane width hpb*Dh = 128).
    q = jnp.dot(xn, wq_ref[...], preferred_element_type=jnp.float32) * scale
    k = jnp.dot(xn, wk_ref[...], preferred_element_type=jnp.float32)
    v = jnp.dot(xn, wv_ref[...], preferred_element_type=jnp.float32)

    # Short static loop over heads inside the lane-dense slab.
    for h in range(heads_per_block):
        lo = h * dim_head
        hi = lo + dim_head
        qh = q[:, lo:hi]                                      # (N, Dh), scale folded in
        kh = k[:, lo:hi]
        vh = v[:, lo:hi]

        # q @ k^T without an explicit transpose (contract over Dh).
        dots = lax.dot_general(qh, kh, (((1,), (1,)), ((), ())),
                               preferred_element_type=jnp.float32)   # (N, N)
        dots = dots - jnp.max(dots, axis=-1, keepdims=True)
        e = jnp.exp(dots)
        p = e * pl.reciprocal(jnp.sum(e, axis=-1, keepdims=True), approx=True)
        # dropout(p=0.0) is the identity -> omitted
        oh = jnp.dot(p, vh, preferred_element_type=jnp.float32)      # (N, Dh)
        # Partial output projection against this head's row slice of W_out.
        acc_ref[...] += jnp.dot(oh, wo_ref[lo:hi, :],
                                preferred_element_type=jnp.float32)  # (N, D)

    @pl.when(g == pl.num_programs(1) - 1)
    def _():
        o_ref[0] = (acc_ref[...] + bo_ref[...]).astype(o_ref.dtype)


# --------------------------------------------------------------------------
# Wrapper
# --------------------------------------------------------------------------
def attention_forward(x, params, *, heads, dim_head):
    B, N, D = x.shape
    inner = heads * dim_head
    scale = dim_head ** (-0.5)

    hpb = _pick_heads_per_block(heads, dim_head)
    n_groups = heads // hpb
    hw = hpb * dim_head  # lane width of each q/k/v weight slab (multiple of 128)

    # TODO(synk): for very long N, tile the sequence / use an online-softmax KV
    # loop so the (N, N) dots tile stays within VMEM (matters on v7x @ 64 MiB).
    cost = pl.CostEstimate(
        flops=int(B * (2 * N * D * 3 * inner            # qkv projection
                       + heads * 4 * N * N * dim_head   # qk^T and p@v
                       + 2 * N * inner * D              # output projection
                       + 8 * N * D)),                   # layernorm
        transcendentals=int(B * heads * (N * N + N)),
        bytes_accessed=int(4 * (B * N * D                          # x
                                + B * (D * 3 * inner + inner * D + 3 * D)  # weights
                                + B * N * D)),                     # output
    )

    y = pl.pallas_call(
        functools.partial(fused_attn_kernel,
                          heads_per_block=hpb, dim_head=dim_head, scale=scale),
        out_shape=jax.ShapeDtypeStruct((B, N, D), jnp.float32),
        grid=(B, n_groups),
        in_specs=[
            # x is index-invariant along g -> DMA'd once per batch row.
            pl.BlockSpec((1, N, D), lambda b, g: (b, 0, 0)),
            pl.BlockSpec((1, D), lambda b, g: (0, 0)),            # ln gamma
            pl.BlockSpec((1, D), lambda b, g: (0, 0)),            # ln beta
            # Column slabs of the packed W_qkv for this head group's q / k / v.
            pl.BlockSpec((D, hw), lambda b, g: (0, g)),
            pl.BlockSpec((D, hw), lambda b, g, _n=n_groups: (0, _n + g)),
            pl.BlockSpec((D, hw), lambda b, g, _n=n_groups: (0, 2 * _n + g)),
            # Matching row slab of W_out, and the bias.
            pl.BlockSpec((hw, D), lambda b, g: (g, 0)),
            pl.BlockSpec((1, D), lambda b, g: (0, 0)),
        ],
        # Same output block across the head-group axis -> accumulator resident.
        out_specs=pl.BlockSpec((1, N, D), lambda b, g: (b, 0, 0)),
        scratch_shapes=[pltpu.VMEM((N, D), jnp.float32),   # cached LayerNorm(x)
                        pltpu.VMEM((N, D), jnp.float32)],  # output accumulator
        compiler_params=pltpu.CompilerParams(
            dimension_semantics=("parallel", "arbitrary")),
        cost_estimate=cost,
    )(x, params["ln_gamma"], params["ln_beta"],
      params["w_qkv"], params["w_qkv"], params["w_qkv"],
      params["w_out"], params["b_out"])
    return y


# --------------------------------------------------------------------------
# Pure-JAX reference (for correctness check)
# --------------------------------------------------------------------------
def attention_reference(x, params, *, heads, dim_head):
    B, N, D = x.shape
    inner = heads * dim_head
    mu = jnp.mean(x, axis=-1, keepdims=True)
    var = jnp.mean((x - mu) ** 2, axis=-1, keepdims=True)
    xn = (x - mu) / jnp.sqrt(var + LN_EPS)
    xn = xn * params["ln_gamma"][0] + params["ln_beta"][0]
    qkv = xn @ params["w_qkv"]
    q, k, v = jnp.split(qkv, 3, axis=-1)

    def to_heads(t):
        return jnp.transpose(t.reshape(B, N, heads, dim_head), (0, 2, 1, 3))

    q, k, v = map(to_heads, (q, k, v))
    dots = jnp.einsum("bhnd,bhmd->bhnm", q, k) * (dim_head ** -0.5)
    attn = jax.nn.softmax(dots, axis=-1)
    o = jnp.einsum("bhnm,bhmd->bhnd", attn, v)
    o = jnp.transpose(o, (0, 2, 1, 3)).reshape(B, N, inner)
    return o @ params["w_out"] + params["b_out"][0]


if __name__ == "__main__":
    # Small shapes consistent with the module defaults (project_out=True).
    B, N, D = 2, 8, 32
    heads, dim_head = 8, 64
    inner = heads * dim_head

    key = jax.random.PRNGKey(0)
    k_x, k_w1, k_w2, k_b2 = jax.random.split(key, 4)

    x = jax.random.normal(k_x, (B, N, D), dtype=jnp.float32)

    params = {
        "ln_gamma": jnp.ones((1, D), jnp.float32),
        "ln_beta": jnp.zeros((1, D), jnp.float32),
        # nn.Linear stores weight (out, in); pre-transposed to (in, out).
        "w_qkv": 0.05 * jax.random.normal(k_w1, (D, 3 * inner), jnp.float32),
        "w_out": 0.05 * jax.random.normal(k_w2, (inner, D), jnp.float32),
        "b_out": 0.05 * jax.random.normal(k_b2, (1, D), jnp.float32),
    }

    y = attention_forward(x, params, heads=heads, dim_head=dim_head)
    y = jax.block_until_ready(y)

    y_ref = attention_reference(x, params, heads=heads, dim_head=dim_head)
    assert y.shape == (B, N, D)
    # Slightly looser than 1e-4 because the softmax denominator uses the EUP
    # approximate reciprocal (pl.reciprocal(approx=True)).
    assert jnp.allclose(y, y_ref, rtol=2e-3, atol=2e-3), "mismatch vs reference"

    print("KERNEL_OK")
</pallas_src>

<mosaic_0001>
module attributes {stable_mosaic.version = 11 : i64} {
  func.func @fused_attn_kernel(%arg0: i32, %arg1: i32, %arg2: memref<1x8x32xf32, #tpu.memory_space<vmem>>, %arg3: memref<1x32xf32, #tpu.memory_space<vmem>>, %arg4: memref<1x32xf32, #tpu.memory_space<vmem>>, %arg5: memref<32x128xf32, #tpu.memory_space<vmem>>, %arg6: memref<32x128xf32, #tpu.memory_space<vmem>>, %arg7: memref<32x128xf32, #tpu.memory_space<vmem>>, %arg8: memref<128x32xf32, #tpu.memory_space<vmem>>, %arg9: memref<1x32xf32, #tpu.memory_space<vmem>>, %arg10: memref<1x8x32xf32, #tpu.memory_space<vmem>>, %arg11: memref<8x32xf32, #tpu.memory_space<vmem>>, %arg12: memref<8x32xf32, #tpu.memory_space<vmem>>) attributes {dimension_semantics = [#tpu.dimension_semantics<parallel>, #tpu.dimension_semantics<arbitrary>], iteration_bounds = array<i64: 2, 4>, scalar_prefetch = 0 : i64, scratch_operands = 2 : i64, tpu.core_type = #tpu.core_type<tc>, window_params = [{transform_indices = @transform_0, window_bounds = array<i64: 1, 8, 32>}, {pipeline_mode = #tpu.pipeline_mode<synchronous>, transform_indices = @transform_1, window_bounds = array<i64: 1, 32>}, {pipeline_mode = #tpu.pipeline_mode<synchronous>, transform_indices = @transform_2, window_bounds = array<i64: 1, 32>}, {transform_indices = @transform_3, window_bounds = array<i64: 32, 128>}, {transform_indices = @transform_4, window_bounds = array<i64: 32, 128>}, {transform_indices = @transform_5, window_bounds = array<i64: 32, 128>}, {transform_indices = @transform_6, window_bounds = array<i64: 128, 32>}, {pipeline_mode = #tpu.pipeline_mode<synchronous>, transform_indices = @transform_7, window_bounds = array<i64: 1, 32>}, {transform_indices = @transform_8, window_bounds = array<i64: 1, 8, 32>}]} {
    %c0_i32 = arith.constant 0 : i32
    %0 = arith.cmpi eq, %arg1, %c0_i32 : i32
    %1 = arith.extui %0 : i1 to i32
    %c0_i32_0 = arith.constant 0 : i32
    %2 = arith.cmpi ne, %1, %c0_i32_0 : i32
    scf.if %2 {
      %c0_33 = arith.constant 0 : index
      %c0_34 = arith.constant 0 : index
      %c0_35 = arith.constant 0 : index
      %55 = vector.load %arg2[%c0_33, %c0_34, %c0_35] : memref<1x8x32xf32, #tpu.memory_space<vmem>>, vector<1x8x32xf32>
      %56 = vector.shape_cast %55 : vector<1x8x32xf32> to vector<8x32xf32>
      %cst_36 = arith.constant dense<0.000000e+00> : vector<8xf32>
      %57 = vector.multi_reduction <add>, %56, %cst_36 [1] : vector<8x32xf32> to vector<8xf32>
      %58 = vector.shape_cast %57 : vector<8xf32> to vector<8x1xf32>
      %cst_37 = arith.constant 3.200000e+01 : f32
      %59 = vector.broadcast %cst_37 : f32 to vector<8x1xf32>
      %60 = arith.divf %58, %59 : vector<8x1xf32>
      %61 = vector.broadcast %60 : vector<8x1xf32> to vector<8x32xf32>
      %62 = arith.subf %56, %61 : vector<8x32xf32>
      %63 = arith.mulf %62, %62 : vector<8x32xf32>
      %cst_38 = arith.constant dense<0.000000e+00> : vector<8xf32>
      %64 = vector.multi_reduction <add>, %63, %cst_38 [1] : vector<8x32xf32> to vector<8xf32>
      %65 = vector.shape_cast %64 : vector<8xf32> to vector<8x1xf32>
      %cst_39 = arith.constant 3.200000e+01 : f32
      %66 = vector.broadcast %cst_39 : f32 to vector<8x1xf32>
      %67 = arith.divf %65, %66 : vector<8x1xf32>
      %68 = vector.broadcast %60 : vector<8x1xf32> to vector<8x32xf32>
      %69 = arith.subf %56, %68 : vector<8x32xf32>
      %cst_40 = arith.constant 9.99999974E-6 : f32
      %70 = vector.broadcast %cst_40 : f32 to vector<8x1xf32>
      %71 = arith.addf %67, %70 : vector<8x1xf32>
      %72 = math.rsqrt %71 : vector<8x1xf32>
      %73 = vector.broadcast %72 : vector<8x1xf32> to vector<8x32xf32>
      %74 = arith.mulf %69, %73 : vector<8x32xf32>
      %c0_41 = arith.constant 0 : index
      %c0_42 = arith.constant 0 : index
      %75 = vector.load %arg3[%c0_41, %c0_42] : memref<1x32xf32, #tpu.memory_space<vmem>>, vector<1x32xf32>
      %76 = vector.broadcast %75 : vector<1x32xf32> to vector<8x32xf32>
      %77 = arith.mulf %74, %76 : vector<8x32xf32>
      %c0_43 = arith.constant 0 : index
      %c0_44 = arith.constant 0 : index
      %78 = vector.load %arg4[%c0_43, %c0_44] : memref<1x32xf32, #tpu.memory_space<vmem>>, vector<1x32xf32>
      %79 = vector.broadcast %78 : vector<1x32xf32> to vector<8x32xf32>
      %80 = arith.addf %77, %79 : vector<8x32xf32>
      %c0_45 = arith.constant 0 : index
      %c0_46 = arith.constant 0 : index
      %81 = vector.load %arg11[%c0_45, %c0_46] : memref<8x32xf32, #tpu.memory_space<vmem>>, vector<8x32xf32>
      tpu.vector_store %arg11[%c0_45, %c0_46], %80 {strides = array<i32>} : memref<8x32xf32, #tpu.memory_space<vmem>>, vector<8x32xf32>,
      %cst_47 = arith.constant 0.000000e+00 : f32
      %82 = vector.broadcast %cst_47 : f32 to vector<8x32xf32>
      %c0_48 = arith.constant 0 : index
      %c0_49 = arith.constant 0 : index
      %83 = vector.load %arg12[%c0_48, %c0_49] : memref<8x32xf32, #tpu.memory_space<vmem>>, vector<8x32xf32>
      tpu.vector_store %arg12[%c0_48, %c0_49], %82 {strides = array<i32>} : memref<8x32xf32, #tpu.memory_space<vmem>>, vector<8x32xf32>,
    } else {
    }
    %c0 = arith.constant 0 : index
    %c0_1 = arith.constant 0 : index
    %3 = vector.load %arg11[%c0, %c0_1] : memref<8x32xf32, #tpu.memory_space<vmem>>, vector<8x32xf32>
    %c0_2 = arith.constant 0 : index
    %c0_3 = arith.constant 0 : index
    %4 = vector.load %arg5[%c0_2, %c0_3] : memref<32x128xf32, #tpu.memory_space<vmem>>, vector<32x128xf32>
    %cst = arith.constant dense<0.000000e+00> : vector<8x128xf32>
    %5 = tpu.matmul %3, %4, %cst {dimension_numbers = #tpu.dot_dimension_numbers<[1], [0], [0], [1], [0, 0, 1, 1], [], []>} : vector<8x32xf32>, vector<32x128xf32>, vector<8x128xf32> -> vector<8x128xf32>
    %cst_4 = arith.constant 1.250000e-01 : f32
    %6 = vector.broadcast %cst_4 : f32 to vector<8x128xf32>
    %7 = arith.mulf %5, %6 : vector<8x128xf32>
    %c0_5 = arith.constant 0 : index
    %c0_6 = arith.constant 0 : index
    %8 = vector.load %arg6[%c0_5, %c0_6] : memref<32x128xf32, #tpu.memory_space<vmem>>, vector<32x128xf32>
    %cst_7 = arith.constant dense<0.000000e+00> : vector<8x128xf32>
    %9 = tpu.matmul %3, %8, %cst_7 {dimension_numbers = #tpu.dot_dimension_numbers<[1], [0], [0], [1], [0, 0, 1, 1], [], []>} : vector<8x32xf32>, vector<32x128xf32>, vector<8x128xf32> -> vector<8x128xf32>
    %c0_8 = arith.constant 0 : index
    %c0_9 = arith.constant 0 : index
    %10 = vector.load %arg7[%c0_8, %c0_9] : memref<32x128xf32, #tpu.memory_space<vmem>>, vector<32x128xf32>
    %cst_10 = arith.constant dense<0.000000e+00> : vector<8x128xf32>
    %11 = tpu.matmul %3, %10, %cst_10 {dimension_numbers = #tpu.dot_dimension_numbers<[1], [0], [0], [1], [0, 0, 1, 1], [], []>} : vector<8x32xf32>, vector<32x128xf32>, vector<8x128xf32> -> vector<8x128xf32>
    %12 = vector.extract_strided_slice %7 {offsets = [0, 0], sizes = [8, 64], strides = [1, 1]} : vector<8x128xf32> to vector<8x64xf32>
    %13 = vector.extract_strided_slice %9 {offsets = [0, 0], sizes = [8, 64], strides = [1, 1]} : vector<8x128xf32> to vector<8x64xf32>
    %14 = vector.extract_strided_slice %11 {offsets = [0, 0], sizes = [8, 64], strides = [1, 1]} : vector<8x128xf32> to vector<8x64xf32>
    %cst_11 = arith.constant dense<0.000000e+00> : vector<8x8xf32>
    %15 = tpu.matmul %12, %13, %cst_11 {dimension_numbers = #tpu.dot_dimension_numbers<[1], [1], [0], [0], [0, 0, 1, 0], [], []>} : vector<8x64xf32>, vector<8x64xf32>, vector<8x8xf32> -> vector<8x8xf32>
    %cst_12 = arith.constant dense<0xFF800000> : vector<8xf32>
    %16 = vector.multi_reduction <maximumf>, %15, %cst_12 [1] : vector<8x8xf32> to vector<8xf32>
    %17 = vector.shape_cast %16 : vector<8xf32> to vector<8x1xf32>
    %18 = vector.broadcast %17 : vector<8x1xf32> to vector<8x8xf32>
    %19 = arith.subf %15, %18 : vector<8x8xf32>
    %20 = math.exp %19 : vector<8x8xf32>
    %cst_13 = arith.constant dense<0.000000e+00> : vector<8xf32>
    %21 = vector.multi_reduction <add>, %20, %cst_13 [1] : vector<8x8xf32> to vector<8xf32>
    %22 = vector.shape_cast %21 : vector<8xf32> to vector<8x1xf32>
    %23 = tpu.reciprocal %22 {approx = true} : vector<8x1xf32> -> vector<8x1xf32>
    %24 = vector.broadcast %23 : vector<8x1xf32> to vector<8x8xf32>
    %25 = arith.mulf %20, %24 : vector<8x8xf32>
    %cst_14 = arith.constant dense<0.000000e+00> : vector<8x64xf32>
    %26 = tpu.matmul %25, %14, %cst_14 {dimension_numbers = #tpu.dot_dimension_numbers<[1], [0], [0], [1], [0, 0, 1, 1], [], []>} : vector<8x8xf32>, vector<8x64xf32>, vector<8x64xf32> -> vector<8x64xf32>
    %c0_15 = arith.constant 0 : index
    %c0_16 = arith.constant 0 : index
    %27 = vector.load %arg12[%c0_15, %c0_16] : memref<8x32xf32, #tpu.memory_space<vmem>>, vector<8x32xf32>
    %c0_17 = arith.constant 0 : index
    %c0_18 = arith.constant 0 : index
    %28 = vector.load %arg8[%c0_17, %c0_18] : memref<128x32xf32, #tpu.memory_space<vmem>>, vector<64x32xf32>
    %cst_19 = arith.constant dense<0.000000e+00> : vector<8x32xf32>
    %29 = tpu.matmul %26, %28, %cst_19 {dimension_numbers = #tpu.dot_dimension_numbers<[1], [0], [0], [1], [0, 0, 1, 1], [], []>} : vector<8x64xf32>, vector<64x32xf32>, vector<8x32xf32> -> vector<8x32xf32>
    %30 = arith.addf %27, %29 : vector<8x32xf32>
    %c0_20 = arith.constant 0 : index
    %c0_21 = arith.constant 0 : index
    %31 = vector.load %arg12[%c0_20, %c0_21] : memref<8x32xf32, #tpu.memory_space<vmem>>, vector<8x32xf32>
    tpu.vector_store %arg12[%c0_20, %c0_21], %30 {strides = array<i32>} : memref<8x32xf32, #tpu.memory_space<vmem>>, vector<8x32xf32>,
    %32 = vector.extract_strided_slice %7 {offsets = [0, 64], sizes = [8, 64], strides = [1, 1]} : vector<8x128xf32> to vector<8x64xf32>
    %33 = vector.extract_strided_slice %9 {offsets = [0, 64], sizes = [8, 64], strides = [1, 1]} : vector<8x128xf32> to vector<8x64xf32>
    %34 = vector.extract_strided_slice %11 {offsets = [0, 64], sizes = [8, 64], strides = [1, 1]} : vector<8x128xf32> to vector<8x64xf32>
    %cst_22 = arith.constant dense<0.000000e+00> : vector<8x8xf32>
    %35 = tpu.matmul %32, %33, %cst_22 {dimension_numbers = #tpu.dot_dimension_numbers<[1], [1], [0], [0], [0, 0, 1, 0], [], []>} : vector<8x64xf32>, vector<8x64xf32>, vector<8x8xf32> -> vector<8x8xf32>
    %cst_23 = arith.constant dense<0xFF800000> : vector<8xf32>
    %36 = vector.multi_reduction <maximumf>, %35, %cst_23 [1] : vector<8x8xf32> to vector<8xf32>
    %37 = vector.shape_cast %36 : vector<8xf32> to vector<8x1xf32>
    %38 = vector.broadcast %37 : vector<8x1xf32> to vector<8x8xf32>
    %39 = arith.subf %35, %38 : vector<8x8xf32>
    %40 = math.exp %39 : vector<8x8xf32>
    %cst_24 = arith.constant dense<0.000000e+00> : vector<8xf32>
    %41 = vector.multi_reduction <add>, %40, %cst_24 [1] : vector<8x8xf32> to vector<8xf32>
    %42 = vector.shape_cast %41 : vector<8xf32> to vector<8x1xf32>
    %43 = tpu.reciprocal %42 {approx = true} : vector<8x1xf32> -> vector<8x1xf32>
    %44 = vector.broadcast %43 : vector<8x1xf32> to vector<8x8xf32>
    %45 = arith.mulf %40, %44 : vector<8x8xf32>
    %cst_25 = arith.constant dense<0.000000e+00> : vector<8x64xf32>
    %46 = tpu.matmul %45, %34, %cst_25 {dimension_numbers = #tpu.dot_dimension_numbers<[1], [0], [0], [1], [0, 0, 1, 1], [], []>} : vector<8x8xf32>, vector<8x64xf32>, vector<8x64xf32> -> vector<8x64xf32>
    %c0_26 = arith.constant 0 : index
    %c0_27 = arith.constant 0 : index
    %47 = vector.load %arg12[%c0_26, %c0_27] : memref<8x32xf32, #tpu.memory_space<vmem>>, vector<8x32xf32>
    %c64 = arith.constant 64 : index
    %c0_28 = arith.constant 0 : index
    %48 = vector.load %arg8[%c64, %c0_28] : memref<128x32xf32, #tpu.memory_space<vmem>>, vector<64x32xf32>
    %cst_29 = arith.constant dense<0.000000e+00> : vector<8x32xf32>
    %49 = tpu.matmul %46, %48, %cst_29 {dimension_numbers = #tpu.dot_dimension_numbers<[1], [0], [0], [1], [0, 0, 1, 1], [], []>} : vector<8x64xf32>, vector<64x32xf32>, vector<8x32xf32> -> vector<8x32xf32>
    %50 = arith.addf %47, %49 : vector<8x32xf32>
    %c0_30 = arith.constant 0 : index
    %c0_31 = arith.constant 0 : index
    %51 = vector.load %arg12[%c0_30, %c0_31] : memref<8x32xf32, #tpu.memory_space<vmem>>, vector<8x32xf32>
    tpu.vector_store %arg12[%c0_30, %c0_31], %50 {strides = array<i32>} : memref<8x32xf32, #tpu.memory_space<vmem>>, vector<8x32xf32>,
    %c3_i32 = arith.constant 3 : i32
    %52 = arith.cmpi eq, %arg1, %c3_i32 : i32
    %53 = arith.extui %52 : i1 to i32
    %c0_i32_32 = arith.constant 0 : i32
    %54 = arith.cmpi ne, %53, %c0_i32_32 : i32
    scf.if %54 {
      %c0_33 = arith.constant 0 : index
      %c0_34 = arith.constant 0 : index
      %55 = vector.load %arg12[%c0_33, %c0_34] : memref<8x32xf32, #tpu.memory_space<vmem>>, vector<8x32xf32>
      %c0_35 = arith.constant 0 : index
      %c0_36 = arith.constant 0 : index
      %56 = vector.load %arg9[%c0_35, %c0_36] : memref<1x32xf32, #tpu.memory_space<vmem>>, vector<1x32xf32>
      %57 = vector.broadcast %56 : vector<1x32xf32> to vector<8x32xf32>
      %58 = arith.addf %55, %57 : vector<8x32xf32>
      %c0_37 = arith.constant 0 : index
      %c0_38 = arith.constant 0 : index
      %c0_39 = arith.constant 0 : index
      %59 = vector.load %arg10[%c0_37, %c0_38, %c0_39] : memref<1x8x32xf32, #tpu.memory_space<vmem>>, vector<1x8x32xf32>
      %60 = vector.shape_cast %59 : vector<1x8x32xf32> to vector<8x32xf32>
      %61 = vector.shape_cast %58 : vector<8x32xf32> to vector<1x8x32xf32>
      tpu.vector_store %arg10[%c0_37, %c0_38, %c0_39], %61 {strides = array<i32>} : memref<1x8x32xf32, #tpu.memory_space<vmem>>, vector<1x8x32xf32>,
    } else {
    }
    return
  }
  func.func @transform_0(%arg0: i32, %arg1: i32) -> (i32, i32, i32) {
    %c0_i32 = arith.constant 0 : i32
    %c0_i32_0 = arith.constant 0 : i32
    %c0_i32_1 = arith.constant 0 : i32
    return %arg0, %c0_i32, %c0_i32_0 : i32, i32, i32
  }
  func.func @transform_1(%arg0: i32, %arg1: i32) -> (i32, i32) {
    %c0_i32 = arith.constant 0 : i32
    %c0_i32_0 = arith.constant 0 : i32
    %c0_i32_1 = arith.constant 0 : i32
    return %c0_i32, %c0_i32_0 : i32, i32
  }
  func.func @transform_2(%arg0: i32, %arg1: i32) -> (i32, i32) {
    %c0_i32 = arith.constant 0 : i32
    %c0_i32_0 = arith.constant 0 : i32
    %c0_i32_1 = arith.constant 0 : i32
    return %c0_i32, %c0_i32_0 : i32, i32
  }
  func.func @transform_3(%arg0: i32, %arg1: i32) -> (i32, i32) {
    %c0_i32 = arith.constant 0 : i32
    %c0_i32_0 = arith.constant 0 : i32
    return %c0_i32, %arg1 : i32, i32
  }
  func.func @transform_4(%arg0: i32, %arg1: i32) -> (i32, i32) {
    %c4_i32 = arith.constant 4 : i32
    %0 = arith.addi %c4_i32, %arg1 : i32
    %c0_i32 = arith.constant 0 : i32
    %c0_i32_0 = arith.constant 0 : i32
    return %c0_i32, %0 : i32, i32
  }
  func.func @transform_5(%arg0: i32, %arg1: i32) -> (i32, i32) {
    %c8_i32 = arith.constant 8 : i32
    %0 = arith.addi %c8_i32, %arg1 : i32
    %c0_i32 = arith.constant 0 : i32
    %c0_i32_0 = arith.constant 0 : i32
    return %c0_i32, %0 : i32, i32
  }
  func.func @transform_6(%arg0: i32, %arg1: i32) -> (i32, i32) {
    %c0_i32 = arith.constant 0 : i32
    %c0_i32_0 = arith.constant 0 : i32
    return %arg1, %c0_i32 : i32, i32
  }
  func.func @transform_7(%arg0: i32, %arg1: i32) -> (i32, i32) {
    %c0_i32 = arith.constant 0 : i32
    %c0_i32_0 = arith.constant 0 : i32
    %c0_i32_1 = arith.constant 0 : i32
    return %c0_i32, %c0_i32_0 : i32, i32
  }
  func.func @transform_8(%arg0: i32, %arg1: i32) -> (i32, i32, i32) {
    %c0_i32 = arith.constant 0 : i32
    %c0_i32_0 = arith.constant 0 : i32
    %c0_i32_1 = arith.constant 0 : i32
    return %arg0, %c0_i32, %c0_i32_0 : i32, i32, i32
  }
}

</mosaic_0001>

<bundles_post_ra>
// kernel: tpu_custom_call.1
= control target key start
LH: loop header
LB: loop body
LE: loop exit
PB: predicated region body
PF: predicated region fallthrough
CT: control target
= control target key end

     0   :  { %s2556_s0 = inlined_call_operand.vmem [shape: f32[2,8,32], index: 0, kind: input, shape index: {}]   ;;  %s2557_s1 = inlined_call_operand.vmem [shape: f32[1,32], index: 1, kind: input, shape index: {}]   ;;  %s2558_s2 = inlined_call_operand.vmem [shape: f32[1,32], index: 2, kind: input, shape index: {}]   ;;  %s2559_s3 = inlined_call_operand.vmem [shape: f32[32,1536], index: 3, kind: input, shape index: {}]   ;;  %s2560_s4 = inlined_call_operand.hbm [shape: f32[32,1536], index: 4, kind: input, shape index: {}]   ;;  %s2561_s5 = inlined_call_operand.hbm [shape: f32[32,1536], index: 5, kind: input, shape index: {}]   ;;  %s2562_s6 = inlined_call_operand.vmem [shape: f32[512,32], index: 6, kind: input, shape index: {}]   ;;  %s2563_s7 = inlined_call_operand.vmem [shape: f32[1,32], index: 7, kind: input, shape index: {}]   ;;  %s2564_s8 = inlined_call_operand.hbm [shape: f32[2,8,32], index: 8, kind: output, shape index: {}]  }
   0x1   :  { %2578 = sst [smem:[#allocation26_spill]] %s2556_s0 }
   0x2   :  { %2579 = sst [smem:[#allocation27_spill]] %s2557_s1 }
   0x3   :  { %2580 = sst [smem:[#allocation28_spill]] %s2558_s2 }
   0x4   :  { %2581 = sst [smem:[#allocation29_spill]] %s2559_s3 }
   0x5   :  { %2582 = sst [smem:[#allocation30_spill]] %s2560_s4 }
   0x6   :  { %2583 = sst [smem:[#allocation31_spill]] %s2562_s6 }
   0x7   :  { %2584 = sst [smem:[#allocation32_spill]] %s2563_s7 }
   0x8   :  { %2585 = sst [smem:[#allocation33_spill]] %s2564_s8 }
   0x9   :  { %13 = vsyncpa [#allocation6], 0 }
   0xa   :  { %15 = vsyncpa [#allocation6 + $0x1], 0 }
   0xb   :  { %16 = vsyncpa [#allocation9], 0 }
   0xc   :  { %18 = vsyncpa [#allocation9 + $0x1], 0 }
   0xd   :  { %19 = vsyncpa [#allocation7], 0 }
   0xe   :  { %21 = vsyncpa [#allocation7 + $0x1], 0  ;;  %s2076_s27 = smov 0   ;;  %s2078_s28 = smov 0  }
   0xf   :  { %s2080_s29 = smov 0   ;;  %s2082_s30 = smov 0  }
  0x10   :  { %s2084_s9 = smov 0   ;;  %s2086_s10 = smov 0  }
  0x11   :  { %s2088_s11 = smov 0   ;;  %s2090_s12 = smov 0  }
  0x12   :  { %s2092_s13 = smov 0   ;;  %s2094_s14 = smov 0  }
  0x13   :  { %s2096_s15 = smov 0   ;;  %s2098_s16 = smov 0  }
  0x14   :  { %s2100_s17 = smov 0   ;;  %s2102_s18 = smov 0  }
  0x15   :  { %s2104_s19 = smov 0   ;;  %s2106_s20 = smov 0  }
  0x16 LB: > { %2586 = sst [smem:[#allocation14_spill]] %s1966_s29  ;;  %s36_s23 = sadd.s32 1, %s2010_s18  ;;  %s2018_s20 = sphi %s2106_s20, %s27_s20   ;;  %s2014_s19 = sphi %s2104_s19, %s2647_s19   ;;  %s2010_s18 = sphi %s2102_s18, %s2646_s18   ;;  %s2006_s17 = sphi %s2100_s17, %s2633_s17   ;;  %s2002_s16 = sphi %s2098_s16, %s2645_s16   ;;  %s1998_s15 = sphi %s2096_s15, %s2644_s15   ;;  %s1994_s14 = sphi %s2094_s14, %s2631_s14   ;;  %s1990_s13 = sphi %s2092_s13, %s2630_s13   ;;  %s1986_s12 = sphi %s2090_s12, %s2643_s12   ;;  %s1982_s11 = sphi %s2088_s11, %s2642_s11   ;;  %s1978_s10 = sphi %s2086_s10, %s2641_s10   ;;  %s1974_s9 = sphi %s2084_s9, %s2640_s9   ;;  %s1970_s30 = sphi %s2082_s30, %s2639_s30   ;;  %s1966_s29 = sphi %s2080_s29, %s2627_s29   ;;  %s1962_s28 = sphi %s2078_s28, %s2638_s28   ;;  %s1958_s27 = sphi %s2076_s27, %s2636_s27  }
  0x17   : > { %2587 = sst [smem:[#allocation15_spill]] %s1990_s13  ;;  %s39_s24 = sadd.s32 1, %s2014_s19 }
  0x18   : > { %2588 = sst [smem:[#allocation16_spill]] %s1998_s15  ;;  %p37_p0 = scmp.ge.s32.totalorder %s36_s23, 4 }
  0x19   : > { %2589 = sst [smem:[#allocation17_spill]] %s2002_s16  ;;  %s114_s25 = sadd.s32 1, %s1998_s15 }
  0x1a   : > { %2590 = sst [smem:[#allocation18_spill]] %s2014_s19  ;;  %p121_p1 = scmp.ne.s32.totalorder %s1998_s15, %s1994_s14 }
  0x1b   : > { %p122_p2 = scmp.eq.s32.totalorder %s2018_s20, 0  ;;  %s2649_s23 = smov (%p37_p0, %s36_s23), 0 }
  0x1c   : > { %2591 = sst [smem:[#allocation19_spill]] %s2649_s23  ;;  %s2651_s24 = smov (!%p37_p0, %s39_s24), %s2014_s19 }
  0x1d   : > { %s111_s26 = ssub.s32 %s2010_s18, %s2649_s23  ;;  %p2171_p3 = por %p122_p2, %p121_p1 }
  0x1e   : > { %p41_p4 = scmp.ge.s32.totalorder %s2651_s24, 2  ;;  %p112_p5 = scmp.eq.s32.totalorder %s111_s26, 0 }
  0x1f   : > { %s137_s21 = sadd.s32 4, %s2010_s18  ;;  %s138_s8 = sadd.s32 4, %s2649_s23 }
  0x20   : > { %s2653_s24 = smov (%p41_p4, %s2651_s24), 0  ;;  %s139_s2 = ssub.s32 %s137_s21, %s138_s8 }
  0x21   : > { %2593 = sst [smem:[#allocation20_spill]] %s2653_s24  ;;  %s142_s1 = sadd.s32 1, %s1990_s13 }
  0x22   : > { %s2180_s7 = scalar_select %p112_p5, %s1998_s15, %s114_s25  }
  0x23   : > { %p140_p6 = scmp.eq.s32.totalorder %s139_s2, 0  ;;  %p149_p7 = scmp.ne.s32.totalorder %s1990_s13, %s1986_s12 }
  0x24   : > { %2594 = sst [smem:[#allocation21_spill]] %s2180_s7  ;;  %p155_p8 = scmp.ne.s32.totalorder %s1986_s12, %s1982_s11 }
  0x25   : > { %s2595_s26 = sadd.s32 4294967295, %s2018_s20   ;;  %p2198_p10 = por %p149_p7, %p122_p2 }
  0x26   : > { %p2189_p9 = scmp.eq.s32.totalorder %s2595_s26, 0  ;;  %s165_s11 = sadd.s32 8, %s2010_s18 }
  0x27   : > { %s2194_s25 = scalar_select %p140_p6, %s1990_s13, %s142_s1  }
  0x28   : > { %p2204_p11 = por %p2189_p9, %p155_p8  ;;  %s166_s21 = sadd.s32 8, %s2649_s23 }
  0x29   : > { %2597 = sst [smem:[#allocation22_spill]] %s2194_s25  ;;  %s167_s1 = ssub.s32 %s165_s11, %s166_s21 }
  0x2a   : > { %s2599_s2 = scalar_select %p2204_p11, 1, 0 }
  0x2b   : > { %s170_s26 = sadd.s32 1, %s1978_s10  ;;  %p168_p12 = scmp.eq.s32.totalorder %s167_s1, 0 }
  0x2c   : > { %p177_p13 = scmp.ne.s32.totalorder %s1978_s10, %s1974_s9  ;;  %p183_p0 = scmp.ne.s32.totalorder %s1974_s9, %s1970_s30 }
  0x2d   : > { %s240_s7 = ssub.s32 %s2014_s19, %s2653_s24  ;;  %s243_s11 = sadd.s32 1, %s1966_s29 }
  0x2e   : > { %s2218_s25 = scalar_select %p168_p12, %s1978_s10, %s170_s26  }
  0x2f   : > { %p2222_p1 = por %p177_p13, %p122_p2  ;;  %p2228_p4 = por %p183_p0, %p2189_p9 }
  0x30   : > { %2600 = sst [smem:[#allocation23_spill]] %s2218_s25  ;;  %p241_p5 = scmp.eq.s32.totalorder %s240_s7, 0 }
  0x31   : > { %s2602_s16 = scalar_select %p2228_p4, 1, 0 }
  0x32   : > { %p253_p6 = scmp.ne.s32.totalorder %s1966_s29, %s1962_s28  ;;  %s2603_s21 = sadd.s32 4294967295, %s2018_s20  }
  0x33   : > { %p254_p7 = scmp.eq.s32.totalorder %s2603_s21, 7  ;;  %p259_p2 = scmp.ne.s32.totalorder %s1962_s28, %s1958_s27 }
  0x34   : > { %s2238_s1 = scalar_select %p241_p5, %s1966_s29, %s243_s11  }
  0x35   : > { %p2240_p8 = por %p254_p7, %p253_p6  ;;  %s2606_s26 = sadd.s32 4294967294, %s2018_s20  }
  0x36   : > { %2604 = sst [smem:[#allocation24_spill]] %s2238_s1  ;;  %p260_p12 = scmp.eq.s32.totalorder %s2606_s26, 7 }
  0x37   : > { %s2605_s30 = scalar_select %p2240_p8, 1, 0 }
  0x38   : > { %p2248_p13 = por %p260_p12, %p259_p2  ;;  %p1428_p9 = scmp.ge.s32.totalorder %s2018_s20, 8 }
  0x3a   : > { %s2607_s6 = scalar_select %p2248_p13, 1, 0 }
  0x3b   : > { %285 = sbr.rel (%p1428_p9) target bundleno = 137 (0x89), region = 28 }
  0x3c   : > { %2608 = sst [smem:[#allocation25_spill]] %s2607_s6 }
  0x42   : > { %295 = sbr.rel (!%p2171_p3) target bundleno = 80 (0x50), region = 36  ;;  %s297_s7 = sand.u32 (%p2171_p3), 1, %s1998_s15  }
  0x43   : > { %s1430_s11 = sshll.u32 (%p2171_p3), %s2010_s18, 3  ;;  %s1429_s21 = sshll.u32 (%p2171_p3), %s297_s7, 5 }
  0x44   : > { %s2609_s3 = sld [smem:[#allocation29_spill]] (%p2171_p3)  ;;  %s299_s26 = scalar_lea.vmem (%p2171_p3), [#allocation4], %s1429_s21 }
  0x4a   : > { %s301_s19 = scalar_lea.vmem %s2609_s3, %s1430_s11 }
  0x4b   : > { %v335_v0 = vld [vmem:[%s301_s19] sm:$0xff] }
  0x4c   : > { %v337_v1 = vld [vmem:[%s301_s19 + $0x60] sm:$0xff]  ;;  %336 = vst [vmem:[%s299_s26] sm:$0xff] %v335_v0 }
  0x4d   : > { %v339_v2 = vld [vmem:[%s301_s19 + $0xc0] sm:$0xff]  ;;  %338 = vst [vmem:[%s299_s26 + $0x8] sm:$0xff] %v337_v1 }
  0x4e   : > { %340 = vst [vmem:[%s299_s26 + $0x10] sm:$0xff] %v339_v2  ;;  %v341_v3 = vld [vmem:[%s301_s19 + $0x120] sm:$0xff] }
  0x4f   : > { %342 = vst [vmem:[%s299_s26 + $0x18] sm:$0xff] %v341_v3 }
  0x50 PF: > { %s349_s22 = sand.u32 1, %s1990_s13   ;;  %s2572_s7 = sshll.u32 %s2010_s18, 7 }
  0x51   : > { %s1431_s15 = sshll.u32 %s349_s22, 5  ;;  %s2610_s4 = sld [smem:[#allocation30_spill]] }
  0x52   : > { %s353_s19 = scalar_lea.vmem [#allocation5], %s1431_s15  ;;  %s2271_s26 = scalar_lea.sflag [#allocation6], %s349_s22 }
  0x53   : > { %s360_s21 = sshll.u32 %s353_s19, 4  ;;  %s2269_s21 = int_to_ptr.vmem [resolvable:$true] %s360_s21 }
  0x57   : > { %s1314_s11 = scalar_lea.hbm %s2610_s4, %s2572_s7  ;;  %s1798_s23 = scalar_lea.hbm %s2610_s4, 6144 }
  0x58   : > { %s2267_s3 = scalar_lea.hbm %s1314_s11, 512  ;;  %s1822_s25 = scalar_lea.hbm %s1314_s11, 1024 }
  0x59   : > { %p1795_p3 = scmp.ne.s32.totalorder %s2267_s3, %s1822_s25  ;;  %p1799_p6 = scmp.lt.u32.totalorder %s2267_s3, %s2610_s4 }
  0x5a   : > { %p1800_p7 = scmp.lt.u32.totalorder %s1798_s23, %s1822_s25  ;;  %p1802_p12 = scmp.lt.u32.totalorder %s1822_s25, %s2267_s3 }
  0x5b   : > { %p1796_p0 = pnand %p1795_p3, %p2198_p10 }
  0x5c   : > { %p1801_p2 = por %p1800_p7, %p1799_p6 }
  0x5d   : > { %p1797_p5 = pneg %p1796_p0 }
  0x5e   : > { %p1803_p9 = por %p1802_p12, %p1801_p2 }
  0x60   : > { %p1804_p13 = pnand %p1803_p9, %p1797_p5 }
  0x62   : > { %1807 = shalt.err (!%p1804_p13)
}
  0x63   : > { %s1808_s15 = scalar_lea.vmem %s2269_s21, 512  ;;  %s2020_s13 = smov [#allocation5]  }
  0x64   : > { %p1809_p3 = scmp.ne.s32.totalorder %s2269_s21, %s1808_s15  ;;  %s1812_s1 = sshll.u32 %s2020_s13, 4  ;;  %s1813_s1 = int_to_ptr.vmem [resolvable:$false] %s1812_s1 }
  0x65   : > { %s1814_s22 = scalar_lea.vmem %s1813_s1, 1024  ;;  %p1815_p4 = scmp.lt.s32.totalorder %s2269_s21, %s1813_s1 }
  0x66   : > { %p1810_p0 = pnand %p1809_p3, %p2198_p10  ;;  %p1816_p11 = scmp.lt.s32.totalorder %s1814_s22, %s1808_s15 }
  0x68   : > { %p1811_p8 = pneg %p1810_p0  ;;  %p1817_p6 = por %p1816_p11, %p1815_p4 }
  0x6a   : > { %p1818_p7 = pnand %p1817_p6, %p1811_p8 }
  0x6c   : > { %1821 = shalt.err (!%p1818_p7)
}
  0x6d   : > { %s2021_s25 = smov 1536   ;;  %s2022_s7 = smov 128  }
  0x6e   : > { %s2023_s11 = smov 8   ;;  %s370_s19 = sand.u32 1, %s1978_s10  }
  0x6f   : > { %1637 = dma.hbm_to_vmem [thread:$0]  (%p2198_p10), %s2267_s3, 512, %s2269_s21, %s2271_s26, %s2021_s25, %s2022_s7, %s2023_s11  }
  0x70   : > { %s2611_s23 = sshll.u32 %s2010_s18, 7  ;;  %s1433_s1 = sshll.u32 %s370_s19, 5 }
  0x71   : > { %s1320_s13 = scalar_lea.hbm %s2561_s5, %s2611_s23  ;;  %s374_s4 = scalar_lea.vmem [#allocation8], %s1433_s1 }
  0x72   : > { %s2303_s22 = scalar_lea.hbm %s1320_s13, 1024  ;;  %s381_s29 = sshll.u32 %s374_s4, 4  ;;  %s2305_s29 = int_to_ptr.vmem [resolvable:$true] %s381_s29 }
  0x73   : > { %s2307_s8 = scalar_lea.sflag [#allocation9], %s370_s19  ;;  %s1851_s6 = scalar_lea.hbm %s1320_s13, 1536 }
  0x74   : > { %p1824_p10 = scmp.ne.s32.totalorder %s2303_s22, %s1851_s6  ;;  %s1827_s26 = scalar_lea.hbm %s2561_s5, 6144 }
  0x75   : > { %p1828_p8 = scmp.lt.u32.totalorder %s2303_s22, %s2561_s5  ;;  %p1829_p13 = scmp.lt.u32.totalorder %s1827_s26, %s1851_s6 }
  0x76   : > { %p1825_p11 = pnand %p1824_p10, %p2222_p1  ;;  %p1831_p2 = scmp.lt.u32.totalorder %s1851_s6, %s2303_s22 }
  0x77   : > { %p1830_p5 = por %p1829_p13, %p1828_p8 }
  0x78   : > { %p1826_p4 = pneg %p1825_p11 }
  0x79   : > { %p1832_p12 = por %p1831_p2, %p1830_p5 }
  0x7b   : > { %p1833_p9 = pnand %p1832_p12, %p1826_p4 }
  0x7d   : > { %1836 = shalt.err (!%p1833_p9)
}
  0x7e   : > { %s1837_s4 = scalar_lea.vmem %s2305_s29, 512  ;;  %s2024_s19 = smov [#allocation8]  }
  0x7f   : > { %p1838_p3 = scmp.ne.s32.totalorder %s2305_s29, %s1837_s4  ;;  %s1841_s15 = sshll.u32 %s2024_s19, 4  ;;  %s1842_s15 = int_to_ptr.vmem [resolvable:$false] %s1841_s15 }
  0x80   : > { %s1843_s13 = scalar_lea.vmem %s1842_s15, 1024  ;;  %p1844_p7 = scmp.lt.s32.totalorder %s2305_s29, %s1842_s15 }
  0x81   : > { %p1839_p0 = pnand %p1838_p3, %p2222_p1  ;;  %p1845_p10 = scmp.lt.s32.totalorder %s1843_s13, %s1837_s4 }
  0x83   : > { %p1840_p6 = pneg %p1839_p0  ;;  %p1846_p11 = por %p1845_p10, %p1844_p7 }
  0x85   : > { %p1847_p8 = pnand %p1846_p11, %p1840_p6 }
  0x87   : > { %1850 = shalt.err (!%p1847_p8)
}
  0x88   : > { %1638 = dma.hbm_to_vmem [thread:$0]  (%p2222_p1), %s2303_s22, 512, %s2305_s29, %s2307_s8, %s2021_s25, %s2022_s7, %s2023_s11  }
  0x89 PF: > { %p1435_p4 = scmp.ge.s32.totalorder %s2018_s20, 1  ;;  %p398_p13 = scmp.lt.s32.totalorder %s2018_s20, 9 }
  0x8b   : > { %p399_p5 = pnand %p1435_p4, %p398_p13 }
  0x8c   : > { %s405_s6 = sand.u32 (!%p399_p5), 1, %s1994_s14   ;;  %s411_s1 = sand.u32 (!%p399_p5), 1, %s1986_s12  }
  0x8d   : > { %402 = sbr.rel (%p399_p5) target bundleno = 2221 (0x8ad), region = 86  ;;  %s1436_s0 = sshll.u32 (!%p399_p5), %s405_s6, 5 }
  0x8e   : > { %s1437_s3 = sshll.u32 (!%p399_p5), %s411_s1, 5  ;;  %s2337_s21 = scalar_lea.vmem (!%p399_p5), [#allocation4], %s1436_s0 }
  0x8f   : > { %s412_s26 = scalar_lea.sflag (!%p399_p5), [#allocation6], %s411_s1  ;;  %s2339_s23 = scalar_lea.vmem (!%p399_p5), [#allocation5], %s1437_s3 }
  0x90   : > { %p2612_p1 = scmp.ne.s32.totalorder (!%p399_p5), %s2599_s2, 0 }
  0x94   : > { %1945 = dma.done.wait (%p2612_p1), %s412_s26, 512  }
  0x95   : > { %1947 = vsyncadd (%p2612_p1), %s412_s26, 4294966784  ;;  %s420_s29 = sand.u32 1, %s1974_s9   ;;  %p2613_p2 = scmp.ne.s32.totalorder %s2602_s16, 0 }
  0x96   : > { %s1438_s25 = sshll.u32 %s420_s29, 5  ;;  %s421_s7 = scalar_lea.sflag [#allocation9], %s420_s29 }
  0x97   : > { %s2346_s11 = scalar_lea.vmem [#allocation8], %s1438_s25 }
  0x98   : > { %1949 = dma.done.wait (%p2613_p2), %s421_s7, 512  }
  0x99   : > { %1951 = vsyncadd (%p2613_p2), %s421_s7, 4294966784  ;;  %s2614_s14 = sld [smem:[#allocation17_spill]]  ;;  %s472_s22 = sand.u32 1, %s1962_s28  }
  0x9a   : > { %p475_p12 = scmp.lt.s32.totalorder %s2006_s17, 1  ;;  %s2356_s2 = sshll.u32 %s472_s22, 3 }
  0x9b   : > { %s2615_s16 = sld [smem:[#allocation26_spill]]  ;;  %s2616_s3 = sld [smem:[#allocation31_spill]] }
  0x9c   : > { %s476_s24 = scalar_select %p475_p12, %s2006_s17, 1 }
  0x9d   : > { %s474_s29 = scalar_lea.vmem [#allocation10], %s2356_s2 }
  0x9e   : > { %s1440_s4 = sshll.u32 %s476_s24, 3 }
  0x9f   : > { %s1441_s8 = sshll.u32 %s2614_s14, 4  ;;  %p1443_p3 = scmp.ne.s32.totalorder %s2614_s14, 0 }
  0xa0   : > { %p482_p9 = scmp.lt.s32.totalorder %s1441_s8, 63  ;;  %vm492_vm0 = vcmask (!%p1443_p3), 261120   ;;  %v2025_v6 = vmov (!%p1443_p3), 0.0   ;;  %s2617_s14 = sld [smem:[#allocation27_spill]] (!%p1443_p3) }
  0xa1   : > { %s478_s13 = scalar_lea.vmem %s2615_s16, %s1440_s4  ;;  %490 = sbr.rel (%p1443_p3) target bundleno = 477 (0x1dd), region = 102  ;;  %524 = vst.msk [vmem:[#allocation3] sm:$0xff] (!%p1443_p3), %vm492_vm0, %v2025_v6 }
  0xa2   : > { %s2655_s8 = smov (!%p482_p9, %s1441_s8), 63  ;;  %v491_v4 = vld [vmem:[%s478_s13] sm:$0xff] (!%p1443_p3)  ;;  %s2618_s4 = sld [smem:[#allocation28_spill]] (!%p1443_p3) }
  0xa3   : > { %s1442_s6 = sshll.u32 %s2655_s8, 3  ;;  %v493_v5 = vsel (!%p1443_p3), %vm492_vm0, %v491_v4, 0.0 }
  0xa4   : > { %s2366_s26 = scalar_lea.vmem %s2616_s3, %s1442_s6  ;;  %494 = vadd.xlane.f32.xlu0 (!%p1443_p3), %v493_v5 }
  0xa6   : > { %v1444_v16 = vld [vmem:[%s2617_s14] ss:$0 sm:$0xff] (!%p1443_p3) }
  0xa8   : > { %v1445_v18 = vld [vmem:[%s2618_s4] ss:$0 sm:$0xff] }
 0x131   : > { %v495_v7 = vpop.xlane.xlu0 %494 }
 0x132   : > { %v497_v8 = vmul.f32 0.03125, %v495_v7 }
 0x134   : > { %v498_v9 = vsub.f32 %v491_v4, %v497_v8 }
 0x136   : > { %v499_v10 = vmul.f32 %v498_v9, %v498_v9 }
 0x138   : > { %v500_v11 = vsel %vm492_vm0, %v499_v10, 0.0 }
 0x139   : > { %501 = vadd.xlane.f32.xlu0 %v500_v11 }
 0x1c6   : > { %v502_v12 = vpop.xlane.xlu0 %501 }
 0x1c7   : > { %v503_v13 = vmul.f32 0.03125, %v502_v12 }
 0x1c9   : > { %v504_v14 = vadd.f32 1e-05, %v503_v13 }
 0x1cb   : > { %1784 = vrsqrt.f32 %v504_v14 }
 0x1d5   : > { %v1785_v15 = vpop.eup %1784 }
 0x1d6   : > { %v506_v17 = vmul.f32 %v1785_v15, %v498_v9 }
 0x1d8   : > { %v514_v19 = vmul.f32 %v1444_v16, %v506_v17 }
 0x1da   : > { %v522_v20 = vadd.f32 %v1445_v18, %v514_v19 }
 0x1dc   : > { %523 = vst.msk [vmem:[#allocation2] sm:$0xff] %vm492_vm0, %v522_v20 }
 0x1dd PF: > { %v605_v21 = vld [vmem:[%s2339_s23] sm:$0xff]  ;;  %v606_v22 = vld [vmem:[%s2339_s23 + $0x8] sm:$0xff]  ;;  %v2026_v24 = vmov 0.0|0.0   ;;  %v607_v27 = vld [vmem:[%s2339_s23 + $0x10] sm:$0xff]  ;;  %vm2027_vm1 = vmmov 0   ;;  %v2028_v32 = vmov 0.0  }
 0x1de   : > { %v526_v23 = vld [vmem:[%s2337_s21] sm:$0xff]  ;;  %1601 = vmatprep.subr.bf16.mxu1 %v2026_v24  ;;  %1595 = vmatprep.subr.bf16.mxu0 %v2026_v24  ;;  %v1602_v25 = vpack.c.bf16 %v606_v22, %v605_v21  ;;  %v527_v26 = vld [vmem:[%s2337_s21 + $0x8] sm:$0xff]  ;;  %v608_v28 = vld [vmem:[%s2339_s23 + $0x18] sm:$0xff]  ;;  %vm530_vm2 = vcmask 261120   ;;  %vm753_vm3 = vcmask 523264   ;;  %vm830_vm4 = vcmask 64512  }
 0x1df   : > { %v1596_v29 = vpack.c.bf16 %v527_v26, %v526_v23  ;;  %v528_v30 = vld [vmem:[%s2337_s21 + $0x10] sm:$0xff]  ;;  %v529_v31 = vld [vmem:[%s2337_s21 + $0x18] sm:$0xff]  ;;  %1523 = vmatprep.mubr.msk.f32.mxu1 %vm2027_vm1, %v2028_v32  ;;  %1512 = vmatprep.mubr.msk.f32.mxu0 %vm2027_vm1, %v2028_v32  ;;  %v1605_v33 = vpack.c.bf16 %v608_v28, %v607_v27  ;;  %v679_v35 = vld [vmem:[%s2346_s11] sm:$0xff]  ;;  %s2029_s21 = smov 64   ;;  %s2619_s23 = sld [smem:[#allocation17_spill]] }
 0x1e0   : > { %1603 = vmatpush3.bf16.msra.mxu1 %v1602_v25  ;;  %v1599_v34 = vpack.c.bf16 %v529_v31, %v528_v30  ;;  %v680_v36 = vld [vmem:[%s2346_s11 + $0x8] sm:$0xff]  ;;  %v681_v39 = vld [vmem:[%s2346_s11 + $0x10] sm:$0xff]  ;;  %v682_v40 = vld [vmem:[%s2346_s11 + $0x18] sm:$0xff] }
 0x1e1   : > { %1597 = vmatpush3.bf16.msra.mxu0 %v1596_v29  ;;  %1604 = vmatprep.subr.bf16.mxu1 %v2026_v24  ;;  %v1608_v38 = vpack.c.bf16 %v680_v36, %v679_v35  ;;  %v1611_v41 = vpack.c.bf16 %v682_v40, %v681_v39  ;;  %v916_v57 = vld [vmem:[%s2366_s26] sm:$0xff]  ;;  %v917_v58 = vld [vmem:[%s2366_s26 + $0x8] sm:$0xff]  ;;  %v918_v59 = vld [vmem:[%s2366_s26 + $0x10] sm:$0xff] }
 0x1e2   : > { %1598 = vmatprep.subr.bf16.mxu0 %v2026_v24  ;;  %v1614_v60 = vpack.c.bf16 %v917_v58, %v916_v57  ;;  %v919_v61 = vld [vmem:[%s2366_s26 + $0x18] sm:$0xff]  ;;  %v920_v63 = vld [vmem:[%s2366_s26 + $0x20] sm:$0xff]  ;;  %v921_v0 = vld [vmem:[%s2366_s26 + $0x28] sm:$0xff] }
 0x1e3   : > { %v525_v37 = vld [vmem:[#allocation2] sm:$0xff]  ;;  %v1617_v62 = vpack.c.bf16 %v919_v61, %v918_v59  ;;  %v1620_v1 = vpack.c.bf16 %v921_v0, %v920_v63  ;;  %v922_v2 = vld [vmem:[%s2366_s26 + $0x30] sm:$0xff]  ;;  %v923_v3 = vld [vmem:[%s2366_s26 + $0x38] sm:$0xff] }
 0x1e4   : > { %1606 = vmatpush3.bf16.msra.mxu1 %v1605_v33  ;;  %v1623_v4 = vpack.c.bf16 %v923_v3, %v922_v2  ;;  %v915_v21 = vld [vmem:[#allocation3] sm:$0xff]  ;;  %v1166_v27 = vld [vmem:[%s2366_s26 + $0x40] sm:$0xff]  ;;  %v1168_v33 = vld [vmem:[%s2366_s26 + $0x50] sm:$0xff] }
 0x1e5   : > { %1600 = vmatpush3.bf16.msra.mxu0 %v1599_v34  ;;  %1542 = vmatprep.subr.mxu1 %v2028_v32  ;;  %v1167_v28 = vld [vmem:[%s2366_s26 + $0x48] sm:$0xff]  ;;  %v1169_v34 = vld [vmem:[%s2366_s26 + $0x58] sm:$0xff]  ;;  %v1170_v36 = vld [vmem:[%s2366_s26 + $0x60] sm:$0xff]  ;;  %p1457_p0 = scmp.ne.s32.totalorder %s2619_s23, 3 }
 0x1e6   : > { %1607 = vmatprep.subr.bf16.mxu0 %v2026_v24  ;;  %v1626_v30 = vpack.c.bf16 %v1167_v28, %v1166_v27  ;;  %v1629_v35 = vpack.c.bf16 %v1169_v34, %v1168_v33  ;;  %v1172_v39 = vld [vmem:[%s2366_s26 + $0x70] sm:$0xff]  ;;  %v1173_v40 = vld [vmem:[%s2366_s26 + $0x78] sm:$0xff]  ;;  %s2620_s15 = sld [smem:[#allocation32_spill]] (!%p1457_p0) }
 0x1e7   : > { %1524 = vmatmul.mubr.msk.f32.vlgmr.msra.gmra.mrb[0].mxu1 %vm530_vm2, %v525_v37 }
 0x1e8   : > { %1513 = vmatmul.mubr.msk.f32.vlgmr.msra.gmra.mrb[0].mxu0 %vm530_vm2, %v525_v37  ;;  %1544 = vmatprep.mubr.msk.f32.mxu1 %vm2027_vm1, %v2028_v32 }
 0x1e9   : > { %1609 = vmatpush3.bf16.msra.mxu0 %v1608_v38  ;;  %1534 = vmatprep.mubr.msk.f32.mxu0 %vm2027_vm1, %v2028_v32 }
 0x1ea   : > { %1610 = vmatprep.subr.bf16.mxu0 %v2026_v24 }
 0x1ed   : > { %1612 = vmatpush3.bf16.msra.mxu0 %v1611_v41  ;;  %v1635_v41 = vpack.c.bf16 %v1173_v40, %v1172_v39 }
 0x1ee   : > { %1537 = vmatprep.subr.mxu0 %v2028_v32 }
 0x1f0   : > { %1535 = vmatmul.mubr.msk.f32.vlgmr.msra.gmra.mrb[2].mxu0 %vm530_vm2, %v525_v37  ;;  %v1171_v37 = vld [vmem:[%s2366_s26 + $0x68] sm:$0xff] }
 0x1f1   : > { %1539 = vmatprep.mubr.msk.f32.mxu0 %vm2027_vm1, %v2028_v32  ;;  %v1632_v38 = vpack.c.bf16 %v1171_v37, %v1170_v36 }
 0x2ba   : > { %v675_v42 = vpop.f32.mrb[0].mxu1 }
 0x2bb   : > { %1001 = vrot.lane.b32.xlu1 %v675_v42, %s2029_s21  ;;  %v600_v43 = vpop.f32.mrb[0].mxu0  ;;  %v1525_v44 = vpop.f32.mrb[1].mxu1  ;;  %1538 = vmatpush3.xpose.msk.msra.mxu0 %vm753_vm3, %v675_v42 }
 0x2bc   : > { %v604_v45 = vmul.f32 0.125, %v600_v43  ;;  %v1514_v46 = vpop.f32.mrb[1].mxu0  ;;  %1613 = vmatprep.subr.bf16.mxu0 %v2026_v24 }
 0x2be   : > { %1540 = vmatmul.mubr.msk.f32.vlgmr.msra.gmra.mrb[4].mxu0 %vm753_vm3, %v604_v45 }
 0x2bf   : > { %999 = vrot.lane.b32.xlu1 %v604_v45, %s2029_s21  ;;  %1563 = vmatprep.mubr.msk.f32.mxu0 %vm2027_vm1, %v2028_v32 }
 0x2c0   : > { %1615 = vmatpush3.bf16.msra.mxu0 %v1614_v60 }
 0x2c1   : > { %1616 = vmatprep.subr.bf16.mxu0 %v2026_v24 }
 0x2c3   : > { %v749_v47 = vpop.f32.mrb[2].mxu0 }
 0x2c4   : > { %v1536_v48 = vpop.f32.mrb[3].mxu0  ;;  %1543 = vmatpush3.msra.mxu1 %v749_v47  ;;  %1618 = vmatpush3.bf16.msra.mxu0 %v1617_v62 }
 0x2c5   : > { %1566 = vmatprep.subr.mxu1 %v2028_v32  ;;  %1619 = vmatprep.subr.bf16.mxu0 %v2026_v24 }
 0x2c8   : > { %1621 = vmatpush3.bf16.msra.mxu0 %v1620_v1 }
 0x2c9   : > { %1622 = vmatprep.subr.bf16.mxu0 %v2026_v24 }
 0x2cc   : > { %1624 = vmatpush3.bf16.msra.mxu0 %v1623_v4 }
 0x32d   : > { %v1002_v7 = vpop.permute.xlu1 %1001 }
 0x331   : > { %v1000_v9 = vpop.permute.xlu1 %999 }
 0x391   : > { %v826_v49 = vpop.f32.mrb[4].mxu0 }
 0x392   : > { %v1541_v50 = vpop.f32.mrb[5].mxu0  ;;  %v831_v51 = vsel %vm830_vm4, %v826_v49, -inf }
 0x393   : > { %832 = vmax.xlane.f32.xlu0 %v831_v51 }
 0x420   : > { %v833_v52 = vpop.xlane.xlu0 %832 }
 0x421   : > { %v834_v53 = vsub.f32 %v826_v49, %v833_v52 }
 0x423   : > { %v835_v54 = vmul.f32 1.442695, %v834_v53 }
 0x425   : > { %1786 = vpow2.f32 %v835_v54 }
 0x42f   : > { %v1787_v55 = vpop.eup %1786 }
 0x430   : > { %v837_v56 = vsel %vm830_vm4, %v1787_v55, 0.0 }
 0x431   : > { %838 = vadd.xlane.f32.xlu0 %v837_v56 }
 0x4be   : > { %v839_v5 = vpop.xlane.xlu0 %838 }
 0x4bf   : > { %1788 = vrcp.f32 %v839_v5 }
 0x4c9   : > { %v1789_v6 = vpop.eup %1788 }
 0x4ca   : > { %v841_v8 = vmul.f32 %v1789_v6, %v1787_v55 }
 0x4cc   : > { %1545 = vmatmul.mubr.msk.f32.vlgmr.msra.gmra.mrb[2].mxu1 %vm830_vm4, %v841_v8 }
 0x4cd   : > { %1567 = vmatpush3.xpose.msk.msra.mxu1 %vm753_vm3, %v1002_v7  ;;  %1568 = vmatprep.mubr.msk.f32.mxu1 %vm2027_vm1, %v2028_v32 }
 0x4ce   : > { %1571 = vmatprep.subr.mxu1 %v2028_v32 }
 0x4d0   : > { %1569 = vmatmul.mubr.msk.f32.vlgmr.msra.gmra.mrb[4].mxu1 %vm753_vm3, %v1000_v9 }
 0x4d1   : > { %1573 = vmatprep.mubr.msk.f32.mxu1 %vm2027_vm1, %v2028_v32 }
 0x59f   : > { %v911_v10 = vpop.f32.mrb[2].mxu1 }
 0x5a0   : > { %v1546_v11 = vpop.f32.mrb[3].mxu1  ;;  %1564 = vmatmul.mubr.msk.f32.vlgmr.msra.gmra.mrb[6].mxu0 %vm753_vm3, %v911_v10 }
 0x5a3   : > { %v1073_v12 = vpop.f32.mrb[4].mxu1 }
 0x5a4   : > { %v1570_v13 = vpop.f32.mrb[5].mxu1  ;;  %v1077_v14 = vsel %vm830_vm4, %v1073_v12, -inf }
 0x5a5   : > { %1078 = vmax.xlane.f32.xlu0 %v1077_v14 }
 0x5bb   : > { %1089 = vrot.lane.b32.xlu0 %v749_v47, %s2029_s21 }
 0x632   : > { %v1079_v15 = vpop.xlane.xlu0 %1078 }
 0x633   : > { %v1080_v16 = vsub.f32 %v1073_v12, %v1079_v15 }
 0x635   : > { %v1081_v17 = vmul.f32 1.442695, %v1080_v16 }
 0x636   : > { %v1090_v18 = vpop.permute.xlu0 %1089 }
 0x637   : > { %1790 = vpow2.f32 %v1081_v17  ;;  %1572 = vmatpush3.msra.mxu1 %v1090_v18 }
 0x638   : > { %1625 = vmatprep.subr.bf16.mxu1 %v2026_v24 }
 0x641   : > { %v1791_v19 = vpop.eup %1790 }
 0x642   : > { %v1083_v20 = vsel %vm830_vm4, %v1791_v19, 0.0 }
 0x643   : > { %1084 = vadd.xlane.f32.xlu1 %v1083_v20 }
 0x673   : > { %v993_v22 = vpop.f32.mrb[6].mxu0 }
 0x674   : > { %v997_v23 = vadd.f32 %v993_v22, %v915_v21  ;;  %v1565_v25 = vpop.f32.mrb[7].mxu0 }
 0x676   : > { %998 = vst.msk [vmem:[#allocation3] sm:$0xff] %vm530_vm2, %v997_v23 }
 0x6d0   : > { %v1085_v26 = vpop.xlane.xlu1 %1084 }
 0x6d1   : > { %1792 = vrcp.f32 %v1085_v26 }
 0x6db   : > { %v1793_v29 = vpop.eup %1792 }
 0x6dc   : > { %v1087_v31 = vmul.f32 %v1793_v29, %v1791_v19 }
 0x6de   : > { %1574 = vmatmul.mubr.msk.f32.vlgmr.msra.gmra.mrb[6].mxu1 %vm830_vm4, %v1087_v31 }
 0x6df   : > { %1627 = vmatpush3.bf16.msra.mxu1 %v1626_v30  ;;  %1592 = vmatprep.mubr.msk.f32.mxu1 %vm2027_vm1, %v2028_v32  ;;  %v1165_v32 = vld [vmem:[#allocation3] sm:$0xff] }
 0x6e0   : > { %1628 = vmatprep.subr.bf16.mxu1 %v2026_v24 }
 0x6e3   : > { %1630 = vmatpush3.bf16.msra.mxu1 %v1629_v35 }
 0x6e4   : > { %1631 = vmatprep.subr.bf16.mxu1 %v2026_v24 }
 0x6e7   : > { %1633 = vmatpush3.bf16.msra.mxu1 %v1632_v38 }
 0x6e8   : > { %1634 = vmatprep.subr.bf16.mxu1 %v2026_v24  ;;  %v1458_v24 = vld [vmem:[%s2620_s15] ss:$0 sm:$0xff] (!%p1457_p0) }
 0x6eb   : > { %1636 = vmatpush3.bf16.msra.mxu1 %v1635_v41 }
 0x7b1   : > { %v1161_v42 = vpop.f32.mrb[6].mxu1 }
 0x7b2   : > { %v1575_v43 = vpop.f32.mrb[7].mxu1  ;;  %1593 = vmatmul.mubr.msk.f32.vlgmr.msra.gmra.mrb[8].mxu1 %vm753_vm3, %v1161_v42 }
 0x882   : > { %1252 = sbr.rel (%p1457_p0) target bundleno = 2195 (0x893), region = 106 }
 0x885   : > { %v1243_v44 = vpop.f32.mrb[8].mxu1 }
 0x886   : > { %v1247_v45 = vadd.f32 %v1243_v44, %v1165_v32  ;;  %v1594_v46 = vpop.f32.mrb[9].mxu1 }
 0x888   : > { %1248 = vst.msk [vmem:[#allocation3] sm:$0xff] %vm530_vm2, %v1247_v45 }
 0x88f   : > { %v1253_v47 = vld [vmem:[#allocation3] sm:$0xff] }
 0x890   : > { %v1261_v48 = vadd.f32 %v1458_v24, %v1253_v47 }
 0x892   : > { %1262 = vst.msk [vmem:[%s474_s29] sm:$0xff] %vm530_vm2, %v1261_v48 }
 0x893 PF: > { %s1460_s16 = sshll.u32 %s2006_s17, 7  ;;  %s2621_s1 = sld [smem:[#allocation33_spill]] }
 0x894   : > { %s1277_s3 = sshll.u32 %s474_s29, 4  ;;  %s1264_s26 = scalar_lea.sflag [#allocation7], %s472_s22  ;;  %s1278_s3 = int_to_ptr.vmem [resolvable:$true] %s1277_s3 }
 0x895   : > { %s1852_s25 = scalar_lea.vmem %s1278_s3, 128  ;;  %p2622_p7 = scmp.ne.s32.totalorder %s2605_s30, 0 }
 0x896   : > { %p1853_p6 = scmp.ne.s32.totalorder %s1278_s3, %s1852_s25  ;;  %s2030_s7 = smov [#allocation10]  }
 0x897   : > { %s1856_s14 = sshll.u32 %s2030_s7, 4  ;;  %s1857_s14 = int_to_ptr.vmem [resolvable:$false] %s1856_s14 }
 0x898   : > { %p1854_p10 = pnand %p1853_p6, %p2622_p7  ;;  %s1858_s8 = scalar_lea.vmem %s1857_s14, 256 }
 0x899   : > { %s2475_s0 = scalar_lea.hbm %s2621_s1, %s1460_s16  ;;  %p1859_p8 = scmp.lt.s32.totalorder %s1278_s3, %s1857_s14 }
 0x89a   : > { %p1855_p11 = pneg %p1854_p10  ;;  %p1860_p4 = scmp.lt.s32.totalorder %s1858_s8, %s1852_s25 }
 0x89c   : > { %p1861_p13 = por %p1860_p4, %p1859_p8 }
 0x89e   : > { %p1862_p5 = pnand %p1861_p13, %p1855_p11 }
 0x8a0   : > { %1865 = shalt.err (!%p1862_p5)
}
 0x8a1   : > { %s1866_s17 = scalar_lea.hbm %s2475_s0, 128  ;;  %s1870_s29 = scalar_lea.hbm %s2621_s1, 256 }
 0x8a2   : > { %p1867_p1 = scmp.ne.s32.totalorder %s2475_s0, %s1866_s17  ;;  %p1871_p9 = scmp.lt.u32.totalorder %s2475_s0, %s2621_s1 }
 0x8a3   : > { %p1872_p3 = scmp.lt.u32.totalorder %s1870_s29, %s1866_s17  ;;  %p1874_p6 = scmp.lt.u32.totalorder %s1866_s17, %s2475_s0 }
 0x8a4   : > { %p1868_p2 = pnand %p1867_p1, %p2622_p7 }
 0x8a5   : > { %p1873_p0 = por %p1872_p3, %p1871_p9 }
 0x8a6   : > { %p1869_p12 = pneg %p1868_p2 }
 0x8a7   : > { %p1875_p10 = por %p1874_p6, %p1873_p0 }
 0x8a9   : > { %p1876_p11 = pnand %p1875_p10, %p1869_p12 }
 0x8ab   : > { %1879 = shalt.err (!%p1876_p11)
}
 0x8ac   : > { %1641 = dma.vmem_to_hbm [thread:$0]  (%p2622_p7), %s1278_s3, 128, %s2475_s0, %s1264_s26  }
 0x8ad PF: > { %s2623_s21 = sld [smem:[#allocation25_spill]]  ;;  %p1647_p8 = scmp.ge.s32.totalorder %s2018_s20, 2 }
 0x8ae   : > { %s1289_s23 = sand.u32 1, %s1958_s27  }
 0x8af   : > { %s1290_s11 = scalar_lea.sflag [#allocation7], %s1289_s23 }
 0x8b3   : > { %p2624_p4 = scmp.ne.s32.totalorder %s2623_s21, 0 }
 0x8b5   : > { %p1644_p13 = pnand %p1647_p8, %p2624_p4 }
 0x8b7   : > { %1953 = dma.done.wait (!%p1644_p13), %s1290_s11, 128  }
 0x8b8   : > { %1955 = vsyncadd (!%p1644_p13), %s1290_s11, 4294967168  ;;  %s27_s20 = sadd.s32 1, %s2018_s20   ;;  %s2626_s30 = sld [smem:[#allocation14_spill]] }
 0x8b9   : > { %p2503_p5 = scmp.ge.s32.totalorder %s27_s20, 10   ;;  %s2627_s29 = sld [smem:[#allocation24_spill]] }
 0x8ba   : > { %s2628_s15 = sld [smem:[#allocation23_spill]]  ;;  %s2629_s16 = sld [smem:[#allocation15_spill]] }
 0x8bb   : > { %s2630_s13 = sld [smem:[#allocation22_spill]]  ;;  %s2631_s14 = sld [smem:[#allocation16_spill]] }
 0x8bc   : > { %s2632_s6 = sld [smem:[#allocation21_spill]]  ;;  %s2633_s17 = sld [smem:[#allocation18_spill]] }
 0x8bd   : > { %s2634_s0 = sld [smem:[#allocation19_spill]]  ;;  %s2635_s3 = sld [smem:[#allocation20_spill]] }
 0x8be   : > { %s2636_s27 = smov %s1962_s28  ;;  %s2638_s28 = smov %s2626_s30 }
 0x8bf   : > { %s2639_s30 = smov %s1974_s9  ;;  %s2640_s9 = smov %s1978_s10 }
 0x8c0   : > { %s2641_s10 = smov %s2628_s15  ;;  %s2642_s11 = smov %s1986_s12 }
 0x8c1   : > { %s2643_s12 = smov %s2629_s16  ;;  %s2645_s16 = smov %s2010_s18 }
 0x8c2   : > { %s2644_s15 = smov %s2632_s6  ;;  %26 = sbr.rel (!%p2503_p5) target bundleno = 22 (0x16), region = 170 }
 0x8c3   : > { %s2646_s18 = smov %s2634_s0  ;;  %s2647_s19 = smov %s2635_s3 }
 0x8c9   :  { %1295 = vsyncpa [#allocation6], 1 }
 0x8ca   :  { %1297 = vsyncpa [#allocation6 + $0x1], 1 }
 0x8cb   :  { %1298 = vsyncpa [#allocation9], 1 }
 0x8cc   :  { %1300 = vsyncpa [#allocation9 + $0x1], 1 }
 0x8cd   :  { %1301 = vsyncpa [#allocation7], 1 }
 0x8ce   :  { %1303 = vsyncpa [#allocation7 + $0x1], 1 }

</bundles_post_ra>
